<compile_context>
chip_gen: v6e
topology: v6e:2x2x1
jax: 0.10.0
libtpu: 0.0.40
codegen_flags: <defaults>
</compile_context>

<pallas_src>
import jax
import jax.numpy as jnp
import numpy as np
from jax.experimental import pallas as pl
from jax.experimental.pallas import tpu as pltpu

SEQ_LANG = 20      # tokenizer(max_length=20, padding='max_length')
D_IMG    = 2048    # r3m('resnet50') feature dim
D_EMB    = 768     # self.embed_dim == proj output dim
TM_MAX   = 512     # M tile cap (review: 256-512 so the weight is not re-streamed per 128 rows)


def _round_up(x, m):
    return ((x + m - 1) // m) * m


def _tpu_config():
    """Per-generation tiling: K-slab size, N split (v7x megacore), VMEM cap."""
    kind = ""
    try:
        kind = jax.devices()[0].device_kind.lower()
    except Exception:  # pragma: no cover - be conservative if the query fails
        pass
    if "v7" in kind or "7x" in kind:
        # 2 TensorCores/chip, 64 MiB VMEM/TC: split D_EMB across cores, keep <= 48 MiB.
        return dict(tk_max=4096, tn=384, vmem_cap=48 << 20)
    if "v6" in kind or "v5" in kind:
        # 1 TC, 128 MiB VMEM: biggest K slabs, no N split needed.
        return dict(tk_max=8192, tn=768, vmem_cap=96 << 20)
    # Unknown device: conservative defaults.
    return dict(tk_max=2048, tn=768, vmem_cap=48 << 20)


def _choose_tk(d_flat, tk_max):
    """Pick tk so it divides d_flat when possible (no weight padding); else pad once offline."""
    if d_flat <= tk_max:
        return d_flat, d_flat
    for mult in range(tk_max // 128, 0, -1):
        cand = mult * 128
        if d_flat % cand == 0 and cand >= 1024:
            return cand, d_flat           # exact divisor -> zero padding, zero extra traffic
    return tk_max, _round_up(d_flat, tk_max)  # pad ONCE at precompute time


def precompute_fused_params(w_enc, b_enc, w_proj, b_proj, *, tk_max=None, tn=None,
                            vmem_cap=None):
    """Fold the two frozen affine stages into one (d_flat, 768) bf16 affine, ONCE.

    Valid only because the encoder stand-in is linear.  bf16-quantizing the *fused* weight
    means the K-reduction (d_flat terms, ~150K at realistic image sizes) accumulates bf16
    products in f32; expected relative error is ~1e-3..1e-2, covered by the test tolerance.
    """
    cfg = _tpu_config()
    tk_max = tk_max or cfg["tk_max"]
    tn = tn or cfg["tn"]
    vmem_cap = vmem_cap or cfg["vmem_cap"]

    d_flat = w_enc.shape[0]
    tk, k_pad = _choose_tk(d_flat, tk_max)

    w_fused = (w_enc.astype(jnp.float32) @ w_proj.astype(jnp.float32)).astype(jnp.bfloat16)
    b_fused = (b_enc.astype(jnp.float32).reshape(1, -1) @ w_proj.astype(jnp.float32)
               + b_proj.astype(jnp.float32).reshape(1, -1))            # (1, 768) f32
    if k_pad != d_flat:
        # One-time zero pad (exact for the matmul); never re-materialized per call.
        w_fused = jnp.pad(w_fused, ((0, k_pad - d_flat), (0, 0)))

    w_fused = jax.block_until_ready(w_fused)
    b_fused = jax.block_until_ready(b_fused)
    return dict(w_fused=w_fused, b_fused=b_fused, d_flat=d_flat, k_pad=k_pad,
                tk=tk, tn=tn, vmem_cap=vmem_cap)


def _img_proj_kernel(x_ref, w_ref, b_ref, o_ref, acc_ref):
    """One (m, n, k) step of  out = X @ W_fused + b_fused  with f32 accumulation."""
    k = pl.program_id(2)

    @pl.when(k == 0)
    def _init():
        acc_ref[...] = jnp.zeros_like(acc_ref)

    acc_ref[...] += jnp.dot(x_ref[...], w_ref[...],
                            preferred_element_type=jnp.float32)

    @pl.when(k == pl.num_programs(2) - 1)
    def _finalize():
        o_ref[...] = (acc_ref[...] + b_ref[...]).astype(o_ref.dtype)


def _make_weight_spec(tk, tn, deep):
    idx = lambda m, n, k: (k, n)
    if deep:
        try:
            # Deeper pipeline for the weight stream: per-step compute is tiny, so a 3rd
            # buffer keeps the HBM pipe full across step boundaries.
            return pl.BlockSpec((tk, tn), idx, pipeline_mode=pl.Buffered(3))
        except (TypeError, AttributeError):
            pass
    return pl.BlockSpec((tk, tn), idx)


def _img_matmul(x_bf, w_fused, b_fused, *, tm_eff, tk, tn, b_pad, k_pad, vmem_limit,
                deep_weight_pipeline):
    grid = (b_pad // tm_eff, D_EMB // tn, k_pad // tk)   # K (reduction) last
    return pl.pallas_call(
        _img_proj_kernel,
        out_shape=jax.ShapeDtypeStruct((b_pad, D_EMB), jnp.float32),
        grid_spec=pltpu.PrefetchScalarGridSpec(
            num_scalar_prefetch=0,
            grid=grid,
            in_specs=[
                pl.BlockSpec((tm_eff, tk), lambda m, n, k: (m, k)),    # X tile
                _make_weight_spec(tk, tn, deep_weight_pipeline),       # fused weight slab
                pl.BlockSpec((1, tn), lambda m, n, k: (0, n)),         # fused bias
            ],
            out_specs=pl.BlockSpec((tm_eff, tn), lambda m, n, k: (m, n)),
            scratch_shapes=[pltpu.VMEM((tm_eff, tn), jnp.float32)],
        ),
        compiler_params=pltpu.CompilerParams(
            dimension_semantics=("parallel", "parallel", "arbitrary"),
            vmem_limit_bytes=vmem_limit,
        ),
    )(x_bf, w_fused, b_fused)


def r3m_forward(lang_embed, imgs, fused, *, tm=TM_MAX):
    """lang_embed: (B, 20, 768) f32; imgs: (B, C, H, W) f32 NCHW; fused: precomputed params.

    Returns (B, 21, 768) f32, matching torch.cat([lang, proj(r3m(imgs))[:, None]], dim=1).
    """
    B = imgs.shape[0]
    # NCHW row-major flatten like torch .reshape; cast straight to bf16 (no f32 intermediate).
    x_bf = imgs.reshape(B, -1).astype(jnp.bfloat16)
    d_flat, k_pad = fused["d_flat"], fused["k_pad"]
    tk, tn = fused["tk"], fused["tn"]
    assert x_bf.shape[1] == d_flat, "image size does not match the fused weights"

    if B <= tm:
        tm_eff, b_pad = B, B            # single M tile: weight streamed exactly once
    else:
        tm_eff, b_pad = tm, _round_up(B, tm)

    if (b_pad, k_pad) != (B, d_flat):
        # Zero pad is exact for the matmul; required whenever tk does not divide d_flat.
        x_bf = jnp.pad(x_bf, ((0, b_pad - B), (0, k_pad - d_flat)))

    # VMEM budget: 2x X tiles + 3x W slabs + bias + 2x out tiles + acc, with headroom,
    # clamped to the per-generation cap (<= 48 MiB on v7x, <= 96 MiB on v5e/v6e).
    vmem_need = (2 * tm_eff * tk * 2 + 3 * tk * tn * 2 + 2 * tn * 4
                 + 2 * tm_eff * tn * 4 + tm_eff * tn * 4)
    vmem_limit = int(min(max(int(vmem_need * 1.25) + (2 << 20), 16 << 20),
                         fused["vmem_cap"]))

    def _call(deep):
        return _img_matmul(x_bf, fused["w_fused"], fused["b_fused"],
                           tm_eff=tm_eff, tk=tk, tn=tn, b_pad=b_pad, k_pad=k_pad,
                           vmem_limit=vmem_limit, deep_weight_pipeline=deep)

    try:
        img_pad = _call(True)
    except Exception:
        # pipeline_mode / pl.Buffered unsupported on this JAX build: default double-buffering.
        img_pad = _call(False)

    img_embed = img_pad[:B]                                            # (B, 768) f32

    # torch.cat([lang, img_embed], dim=1): pure data movement, left to XLA (routing lang
    # through the kernel would be ~95% of its DMA traffic for zero compute).
    return jnp.concatenate(
        [lang_embed.astype(jnp.float32), img_embed[:, None, :]], axis=1)


if __name__ == "__main__":
    key = jax.random.PRNGKey(0)
    k0, k1, k2, k3, k4, k5 = jax.random.split(key, 6)

    # Small shapes consistent with the module: NCHW images, seq=20, dims 2048 -> 768.
    B, C, H, W = 4, 3, 16, 16                      # d_flat = 768
    imgs = jax.random.normal(k0, (B, C, H, W), jnp.float32)                # NCHW, like PyTorch
    lang_embed = jax.random.normal(k1, (B, SEQ_LANG, D_EMB), jnp.float32)  # distilbert stand-in

    d_flat = C * H * W
    w_enc  = jax.random.normal(k2, (d_flat, D_IMG), jnp.float32) * 0.02    # r3m stand-in params
    b_enc  = jax.random.normal(k3, (1, D_IMG), jnp.float32) * 0.02
    w_proj = jax.random.normal(k4, (D_IMG, D_EMB), jnp.float32) * 0.02     # nn.Linear(2048, 768)
    b_proj = jax.random.normal(k5, (1, D_EMB), jnp.float32) * 0.02

    # Offline (once per frozen-weight set): fold encoder + proj into one bf16 affine.
    fused = precompute_fused_params(w_enc, b_enc, w_proj, b_proj)

    out = jax.block_until_ready(r3m_forward(lang_embed, imgs, fused))

    # Pure-JAX reference of the unfused f32 forward semantics.
    flat = imgs.reshape(B, -1)
    feat = flat @ w_enc + b_enc                     # frozen encoder stand-in -> (B, 2048)
    img_ref = (feat @ w_proj + b_proj)[:, None, :]  # rearrange 'b (seq d)->b seq d' + proj
    ref = jnp.concatenate([lang_embed, img_ref], axis=1)                   # (B, 21, 768)

    assert out.shape == (B, SEQ_LANG + 1, D_EMB) and out.dtype == jnp.float32
    np.testing.assert_allclose(np.asarray(out), np.asarray(ref), rtol=2e-2, atol=2e-2)
    print("KERNEL_OK")
</pallas_src>

<mosaic_0001>
module attributes {stable_mosaic.version = 11 : i64} {
  func.func @_img_proj_kernel(%arg0: i32, %arg1: i32, %arg2: i32, %arg3: memref<4x768xbf16, #tpu.memory_space<vmem>>, %arg4: memref<768x768xbf16, #tpu.memory_space<vmem>>, %arg5: memref<1x768xf32, #tpu.memory_space<vmem>>, %arg6: memref<4x768xf32, #tpu.memory_space<vmem>>, %arg7: memref<4x768xf32, #tpu.memory_space<vmem>>) attributes {dimension_semantics = [#tpu.dimension_semantics<parallel>, #tpu.dimension_semantics<parallel>, #tpu.dimension_semantics<arbitrary>], iteration_bounds = array<i64: 1, 1, 1>, scalar_prefetch = 0 : i64, scratch_operands = 1 : i64, tpu.core_type = #tpu.core_type<tc>, window_params = [{transform_indices = @transform_0, window_bounds = array<i64: 4, 768>}, {transform_indices = @transform_1, window_bounds = array<i64: 768, 768>}, {transform_indices = @transform_2, window_bounds = array<i64: 1, 768>}, {transform_indices = @transform_3, window_bounds = array<i64: 4, 768>}]} {
    %c0_i32 = arith.constant 0 : i32
    %0 = arith.cmpi eq, %arg2, %c0_i32 : i32
    %1 = arith.extui %0 : i1 to i32
    %c0_i32_0 = arith.constant 0 : i32
    %2 = arith.cmpi ne, %1, %c0_i32_0 : i32
    scf.if %2 {
      %cst_10 = arith.constant 0.000000e+00 : f32
      %12 = vector.broadcast %cst_10 : f32 to vector<4x768xf32>
      %c0_11 = arith.constant 0 : index
      %c0_12 = arith.constant 0 : index
      %13 = vector.load %arg7[%c0_11, %c0_12] : memref<4x768xf32, #tpu.memory_space<vmem>>, vector<4x768xf32>
      tpu.vector_store %arg7[%c0_11, %c0_12], %12 {strides = array<i32>} : memref<4x768xf32, #tpu.memory_space<vmem>>, vector<4x768xf32>,
    } else {
    }
    %c0 = arith.constant 0 : index
    %c0_1 = arith.constant 0 : index
    %3 = vector.load %arg7[%c0, %c0_1] : memref<4x768xf32, #tpu.memory_space<vmem>>, vector<4x768xf32>
    %c0_2 = arith.constant 0 : index
    %c0_3 = arith.constant 0 : index
    %4 = vector.load %arg3[%c0_2, %c0_3] : memref<4x768xbf16, #tpu.memory_space<vmem>>, vector<4x768xbf16>
    %c0_4 = arith.constant 0 : index
    %c0_5 = arith.constant 0 : index
    %5 = vector.load %arg4[%c0_4, %c0_5] : memref<768x768xbf16, #tpu.memory_space<vmem>>, vector<768x768xbf16>
    %cst = arith.constant dense<0.000000e+00> : vector<4x768xf32>
    %6 = tpu.matmul %4, %5, %cst {dimension_numbers = #tpu.dot_dimension_numbers<[1], [0], [0], [1], [0, 0, 1, 1], [], []>} : vector<4x768xbf16>, vector<768x768xbf16>, vector<4x768xf32> -> vector<4x768xf32>
    %7 = arith.addf %3, %6 : vector<4x768xf32>
    %c0_6 = arith.constant 0 : index
    %c0_7 = arith.constant 0 : index
    %8 = vector.load %arg7[%c0_6, %c0_7] : memref<4x768xf32, #tpu.memory_space<vmem>>, vector<4x768xf32>
    tpu.vector_store %arg7[%c0_6, %c0_7], %7 {strides = array<i32>} : memref<4x768xf32, #tpu.memory_space<vmem>>, vector<4x768xf32>,
    %c0_i32_8 = arith.constant 0 : i32
    %9 = arith.cmpi eq, %arg2, %c0_i32_8 : i32
    %10 = arith.extui %9 : i1 to i32
    %c0_i32_9 = arith.constant 0 : i32
    %11 = arith.cmpi ne, %10, %c0_i32_9 : i32
    scf.if %11 {
      %c0_10 = arith.constant 0 : index
      %c0_11 = arith.constant 0 : index
      %12 = vector.load %arg7[%c0_10, %c0_11] : memref<4x768xf32, #tpu.memory_space<vmem>>, vector<4x768xf32>
      %c0_12 = arith.constant 0 : index
      %c0_13 = arith.constant 0 : index
      %13 = vector.load %arg5[%c0_12, %c0_13] : memref<1x768xf32, #tpu.memory_space<vmem>>, vector<1x768xf32>
      %14 = vector.broadcast %13 : vector<1x768xf32> to vector<4x768xf32>
      %15 = arith.addf %12, %14 : vector<4x768xf32>
      %c0_14 = arith.constant 0 : index
      %c0_15 = arith.constant 0 : index
      %16 = vector.load %arg6[%c0_14, %c0_15] : memref<4x768xf32, #tpu.memory_space<vmem>>, vector<4x768xf32>
      tpu.vector_store %arg6[%c0_14, %c0_15], %15 {strides = array<i32>} : memref<4x768xf32, #tpu.memory_space<vmem>>, vector<4x768xf32>,
    } else {
    }
    return
  }
  func.func @transform_0(%arg0: i32, %arg1: i32, %arg2: i32) -> (i32, i32) {
    %c0_i32 = arith.constant 0 : i32
    return %arg0, %arg2 : i32, i32
  }
  func.func @transform_1(%arg0: i32, %arg1: i32, %arg2: i32) -> (i32, i32) {
    %c0_i32 = arith.constant 0 : i32
    return %arg2, %arg1 : i32, i32
  }
  func.func @transform_2(%arg0: i32, %arg1: i32, %arg2: i32) -> (i32, i32) {
    %c0_i32 = arith.constant 0 : i32
    %c0_i32_0 = arith.constant 0 : i32
    return %c0_i32, %arg1 : i32, i32
  }
  func.func @transform_3(%arg0: i32, %arg1: i32, %arg2: i32) -> (i32, i32) {
    %c0_i32 = arith.constant 0 : i32
    return %arg0, %arg1 : i32, i32
  }
}

</mosaic_0001>

<bundles_post_ra>
// kernel: tpu_custom_call.1
= control target key start
LH: loop header
LB: loop body
LE: loop exit
PB: predicated region body
PF: predicated region fallthrough
CT: control target
= control target key end

     0   :  { %8 = vsyncpa [#allocation4], 0  ;;  %s3180_s0 = inlined_call_operand.hbm [shape: bf16[4,768], index: 0, kind: input, shape index: {}]   ;;  %s3181_s1 = inlined_call_operand.hbm [shape: bf16[768,768], index: 1, kind: input, shape index: {}]   ;;  %s3182_s2 = inlined_call_operand.hbm [shape: f32[1,768], index: 2, kind: input, shape index: {}]   ;;  %s3183_s3 = inlined_call_operand.hbm [shape: f32[4,768], index: 3, kind: output, shape index: {}]  }
   0x1   :  { %9 = vsyncpa [#allocation7], 0 }
   0x2   :  { %10 = vsyncpa [#allocation5], 0  ;;  %s3088_s12 = smov [#allocation6]  }
   0x3   :  { %s26_s13 = sshll.u32 %s3088_s12, 4  ;;  %s27_s13 = int_to_ptr.vmem [resolvable:$true] %s26_s13 }
   0x4   :  { %s3010_s14 = scalar_lea.vmem %s27_s13, 36864  ;;  %p3015_p1 = scmp.lt.s32.totalorder %s27_s13, %s27_s13 }
   0x5   :  { %p3011_p0 = scmp.ne.s32.totalorder %s27_s13, %s3010_s14  ;;  %p3016_p2 = scmp.lt.s32.totalorder %s3010_s14, %s3010_s14 }
   0x7   :  { %p3017_p3 = por %p3016_p2, %p3015_p1 }
   0x9   :  { %p3018_p4 = pnand %p3017_p3, %p3011_p0 }
   0xb   :  { %3021 = shalt.err (!%p3018_p4)
}
   0xc   :  { %s3089_s15 = smov 384   ;;  %s3090_s16 = smov 24  }
   0xd   :  { %32 = dma.hbm_to_vmem [thread:$0]  %s3181_s1, 36864, %s27_s13, [#allocation7], %s3089_s15, %s3089_s15, %s3090_s16  }
   0xe   :  { %s3091_s19 = smov [#allocation3]   ;;  %s3092_s21 = smov [#allocation8]  }
   0xf   :  { %s17_s20 = sshll.u32 %s3091_s19, 4  ;;  %s39_s22 = sshll.u32 %s3092_s21, 4  ;;  %s18_s20 = int_to_ptr.vmem [resolvable:$true] %s17_s20  ;;  %s40_s22 = int_to_ptr.vmem [resolvable:$true] %s39_s22 }
  0x10   :  { %s3030_s23 = scalar_lea.vmem %s18_s20, 192  ;;  %p3035_p6 = scmp.lt.s32.totalorder %s18_s20, %s18_s20 }
  0x11   :  { %p3031_p5 = scmp.ne.s32.totalorder %s18_s20, %s3030_s23  ;;  %p3036_p7 = scmp.lt.s32.totalorder %s3030_s23, %s3030_s23 }
  0x13   :  { %p3037_p8 = por %p3036_p7, %p3035_p6 }
  0x15   :  { %p3038_p9 = pnand %p3037_p8, %p3031_p5 }
  0x17   :  { %3041 = shalt.err (!%p3038_p9)
}
  0x18   :  { %20 = dma.hbm_to_vmem [thread:$0]  %s3180_s0, 192, %s18_s20, [#allocation4]  }
  0x19   :  { %s3050_s26 = scalar_lea.vmem %s40_s22, 96  ;;  %p3055_p11 = scmp.lt.s32.totalorder %s40_s22, %s40_s22 }
  0x1a   :  { %p3051_p10 = scmp.ne.s32.totalorder %s40_s22, %s3050_s26  ;;  %p3056_p12 = scmp.lt.s32.totalorder %s3050_s26, %s3050_s26 }
  0x1c   :  { %p3057_p13 = por %p3056_p12, %p3055_p11 }
  0x1e   :  { %p3058_p0 = pnand %p3057_p13, %p3051_p10 }
  0x20   :  { %3061 = shalt.err (!%p3058_p0)
}
  0x21   :  { %42 = dma.hbm_to_vmem [thread:$0]  %s3182_s2, 96, %s40_s22, [#allocation7]  }
  0x22   :  { %3082 = dma.done.wait [#allocation4], 192  }
  0x23   :  { %3083 = vsyncadd [#allocation4], 4294967104 }
  0x24   :  { %3084 = dma.done.wait [#allocation7], 36960  }
  0x25   :  { %3085 = vsyncadd [#allocation7], 4294930336  ;;  %v2568_v0 = vld [vmem:[#allocation6 + $0x154] ss:$24 sps:$4 sm:$0xff]   ;;  %v2572_v2 = vld [vmem:[#allocation6 + $0x150] ss:$24 sps:$4 sm:$0xff]   ;;  %v358_v38 = vlaneseq }
  0x26   :  { %v2570_v1 = vld [vmem:[#allocation6 + $0x454] ss:$24 sps:$4 sm:$0xff]   ;;  %1825 = vmatprep.subr.bf16.mxu0 %v2568_v0  ;;  %v2573_v3 = vld [vmem:[#allocation6 + $0x450] ss:$24 sps:$4 sm:$0xff]   ;;  %v2574_v4 = vld [vmem:[#allocation6 + $0x124] ss:$24 sps:$4 sm:$0xff]  }
  0x27   :  { %1866 = vmatprep.subr.bf16.mxu1 %v2570_v1  ;;  %1826 = vmatpush1.bf16.msra.mxu0 %v2572_v2  ;;  %v2576_v5 = vld [vmem:[#allocation6 + $0x424] ss:$24 sps:$4 sm:$0xff]   ;;  %v2578_v6 = vld [vmem:[#allocation6 + $0x120] ss:$24 sps:$4 sm:$0xff]   ;;  %v2580_v8 = vld [vmem:[#allocation6 + $0xf4] ss:$24 sps:$4 sm:$0xff]  }
  0x28   :  { %1867 = vmatpush1.bf16.msra.mxu1 %v2573_v3  ;;  %1827 = vmatprep.subr.bf16.mxu0 %v2574_v4  ;;  %v2579_v7 = vld [vmem:[#allocation6 + $0x420] ss:$24 sps:$4 sm:$0xff]   ;;  %v2582_v9 = vld [vmem:[#allocation6 + $0x3f4] ss:$24 sps:$4 sm:$0xff]   ;;  %v2584_v10 = vld [vmem:[#allocation6 + $0xf0] ss:$24 sps:$4 sm:$0xff]  }
  0x29   :  { %1868 = vmatprep.subr.bf16.mxu1 %v2576_v5  ;;  %v2585_v11 = vld [vmem:[#allocation6 + $0x3f0] ss:$24 sps:$4 sm:$0xff]   ;;  %v2586_v12 = vld [vmem:[#allocation6 + $0xc4] ss:$24 sps:$4 sm:$0xff]   ;;  %v2590_v14 = vld [vmem:[#allocation6 + $0xc0] ss:$24 sps:$4 sm:$0xff]  }
  0x2a   :  { %v2588_v13 = vld [vmem:[#allocation6 + $0x3c4] ss:$24 sps:$4 sm:$0xff]   ;;  %v2591_v15 = vld [vmem:[#allocation6 + $0x3c0] ss:$24 sps:$4 sm:$0xff]   ;;  %v2592_v16 = vld [vmem:[#allocation6 + $0x94] ss:$24 sps:$4 sm:$0xff]  }
  0x2b   :  { %1828 = vmatpush1.bf16.msra.mxu0 %v2578_v6  ;;  %v2594_v17 = vld [vmem:[#allocation6 + $0x394] ss:$24 sps:$4 sm:$0xff]   ;;  %v2596_v18 = vld [vmem:[#allocation6 + $0x90] ss:$24 sps:$4 sm:$0xff]   ;;  %v2598_v20 = vld [vmem:[#allocation6 + $0x64] ss:$24 sps:$4 sm:$0xff]  }
  0x2c   :  { %1869 = vmatpush1.bf16.msra.mxu1 %v2579_v7  ;;  %1829 = vmatprep.subr.bf16.mxu0 %v2580_v8  ;;  %v2597_v19 = vld [vmem:[#allocation6 + $0x390] ss:$24 sps:$4 sm:$0xff]   ;;  %v2600_v21 = vld [vmem:[#allocation6 + $0x364] ss:$24 sps:$4 sm:$0xff]   ;;  %v2602_v22 = vld [vmem:[#allocation6 + $0x60] ss:$24 sps:$4 sm:$0xff]  }
  0x2d   :  { %1870 = vmatprep.subr.bf16.mxu1 %v2582_v9  ;;  %v2603_v23 = vld [vmem:[#allocation6 + $0x360] ss:$24 sps:$4 sm:$0xff]   ;;  %v2604_v24 = vld [vmem:[#allocation6 + $0x34] ss:$24 sps:$4 sm:$0xff]   ;;  %v2608_v26 = vld [vmem:[#allocation6 + $0x30] ss:$24 sps:$4 sm:$0xff]  }
  0x2e   :  { %v2606_v25 = vld [vmem:[#allocation6 + $0x334] ss:$24 sps:$4 sm:$0xff]   ;;  %v2609_v27 = vld [vmem:[#allocation6 + $0x330] ss:$24 sps:$4 sm:$0xff]   ;;  %v2610_v28 = vld [vmem:[#allocation6 + $0x4] ss:$24 sps:$4 sm:$0xff]  }
  0x2f   :  { %1830 = vmatpush1.bf16.msra.mxu0 %v2584_v10  ;;  %v2612_v29 = vld [vmem:[#allocation6 + $0x304] ss:$24 sps:$4 sm:$0xff]   ;;  %v2614_v30 = vld [vmem:[#allocation6] ss:$24 sps:$4 sm:$0xff]   ;;  %v2616_v32 = vld [vmem:[#allocation6 + $0x2d4] ss:$24 sps:$4 sm:$0xff]  }
  0x30   :  { %1871 = vmatpush1.bf16.msra.mxu1 %v2585_v11  ;;  %1831 = vmatprep.subr.bf16.mxu0 %v2586_v12  ;;  %v2615_v31 = vld [vmem:[#allocation6 + $0x300] ss:$24 sps:$4 sm:$0xff]   ;;  %v2618_v33 = vld [vmem:[#allocation6 + $0x5d4] ss:$24 sps:$4 sm:$0xff]   ;;  %v2620_v34 = vld [vmem:[#allocation6 + $0x2d0] ss:$24 sps:$4 sm:$0xff]  }
  0x31   :  { %1872 = vmatprep.subr.bf16.mxu1 %v2588_v13  ;;  %v2621_v35 = vld [vmem:[#allocation6 + $0x5d0] ss:$24 sps:$4 sm:$0xff]   ;;  %v3093_v36 = vmov 1983009808   ;;  %v2622_v39 = vld [vmem:[#allocation6 + $0x2a4] ss:$24 sps:$4 sm:$0xff]  }
  0x32   :  { %v356_v37 = vunpack.c.l.s4 %v3093_v36  ;;  %v2624_v40 = vld [vmem:[#allocation6 + $0x5a4] ss:$24 sps:$4 sm:$0xff]   ;;  %v2626_v41 = vld [vmem:[#allocation6 + $0x2a0] ss:$24 sps:$4 sm:$0xff]   ;;  %v3124_v43 = vshrl.u32 %v358_v38, 7  ;;  %s3094_s0 = smov [#allocation9]  }
  0x33   :  { %1832 = vmatpush1.bf16.msra.mxu0 %v2590_v14  ;;  %v2627_v44 = vld [vmem:[#allocation6 + $0x5a0] ss:$24 sps:$4 sm:$0xff]   ;;  %v2628_v45 = vld [vmem:[#allocation6 + $0x274] ss:$24 sps:$4 sm:$0xff]   ;;  %v2632_v47 = vld [vmem:[#allocation6 + $0x270] ss:$24 sps:$4 sm:$0xff]  }
  0x34   :  { %1873 = vmatpush1.bf16.msra.mxu1 %v2591_v15  ;;  %1833 = vmatprep.subr.bf16.mxu0 %v2592_v16  ;;  %v357_v42 = vunpack.c.0.s8 %v356_v37  ;;  %v2630_v46 = vld [vmem:[#allocation6 + $0x574] ss:$24 sps:$4 sm:$0xff]   ;;  %v2633_v48 = vld [vmem:[#allocation6 + $0x570] ss:$24 sps:$4 sm:$0xff]   ;;  %v2634_v50 = vld [vmem:[#allocation6 + $0x244] ss:$24 sps:$4 sm:$0xff]  }
  0x35   :  { %1874 = vmatprep.subr.bf16.mxu1 %v2594_v17  ;;  %v2636_v51 = vld [vmem:[#allocation6 + $0x544] ss:$24 sps:$4 sm:$0xff]   ;;  %v62_v52 = vld [vmem:[#allocation3] sm:$0xff]  ;;  %v2644_v61 = vld [vmem:[#allocation6 + $0x210] ss:$24 sps:$4 sm:$0xff]   ;;  %s2262_s2 = sshll.u32 %s3094_s0, 4  ;;  %s2263_s2 = int_to_ptr.vmem [resolvable:$true] %s2262_s2 }
  0x36   :  { %v360_v49 = vsub.s32 %v357_v42, %v3124_v43  ;;  %v2638_v53 = vld [vmem:[#allocation6 + $0x240] ss:$24 sps:$4 sm:$0xff]   ;;  %v354_v55 = vcombine.high %v62_v52, %v62_v52  ;;  %v2640_v57 = vld [vmem:[#allocation6 + $0x214] ss:$24 sps:$4 sm:$0xff]   ;;  %v2645_v63 = vld [vmem:[#allocation6 + $0x510] ss:$24 sps:$4 sm:$0xff]   ;;  %p3067_p2 = scmp.lt.s32.totalorder %s2263_s2, %s2263_s2 }
  0x37   :  { %1834 = vmatpush1.bf16.msra.mxu0 %v2596_v18  ;;  %v2639_v56 = vld [vmem:[#allocation6 + $0x540] ss:$24 sps:$4 sm:$0xff]   ;;  %v2642_v58 = vld [vmem:[#allocation6 + $0x514] ss:$24 sps:$4 sm:$0xff]   ;;  %v2646_v0 = vld [vmem:[#allocation6 + $0x1e4] ss:$24 sps:$4 sm:$0xff]  }
  0x38   :  { %1875 = vmatpush1.bf16.msra.mxu1 %v2597_v19  ;;  %1835 = vmatprep.subr.bf16.mxu0 %v2598_v20  ;;  %v3127_v54 = vrot.slane %v62_v52, %v360_v49  ;;  %v3133_v60 = vrot.slane %v354_v55, %v360_v49  ;;  %v2648_v1 = vld [vmem:[#allocation6 + $0x4e4] ss:$24 sps:$4 sm:$0xff]   ;;  %v2650_v2 = vld [vmem:[#allocation6 + $0x1e0] ss:$24 sps:$4 sm:$0xff]   ;;  %v2652_v4 = vld [vmem:[#allocation6 + $0x1b4] ss:$24 sps:$4 sm:$0xff]  }
  0x39   :  { %1876 = vmatprep.subr.bf16.mxu1 %v2600_v21  ;;  %v2651_v3 = vld [vmem:[#allocation6 + $0x4e0] ss:$24 sps:$4 sm:$0xff]   ;;  %v2654_v5 = vld [vmem:[#allocation6 + $0x4b4] ss:$24 sps:$4 sm:$0xff]   ;;  %v2656_v6 = vld [vmem:[#allocation6 + $0x1b0] ss:$24 sps:$4 sm:$0xff]  }
  0x3a   :  { %v3131_v59 = vcombine.high %v3127_v54, %v3127_v54  ;;  %v3138_v62 = vcombine.high %v3133_v60, %v3133_v60  ;;  %v2657_v7 = vld [vmem:[#allocation6 + $0x4b0] ss:$24 sps:$4 sm:$0xff]   ;;  %v2658_v8 = vld [vmem:[#allocation6 + $0x184] ss:$24 sps:$4 sm:$0xff]   ;;  %v2662_v10 = vld [vmem:[#allocation6 + $0x180] ss:$24 sps:$4 sm:$0xff]  }
  0x3b   :  { %1836 = vmatpush1.bf16.msra.mxu0 %v2602_v22  ;;  %v2660_v9 = vld [vmem:[#allocation6 + $0x484] ss:$24 sps:$4 sm:$0xff]   ;;  %v2663_v11 = vld [vmem:[#allocation6 + $0x480] ss:$24 sps:$4 sm:$0xff]   ;;  %v2667_v12 = vld [vmem:[#allocation6 + $0x754] ss:$24 sps:$4 sm:$0xff]  }
  0x3c   :  { %1877 = vmatpush1.bf16.msra.mxu1 %v2603_v23  ;;  %1837 = vmatprep.subr.bf16.mxu0 %v2604_v24  ;;  %v2670_v13 = vld [vmem:[#allocation6 + $0x15c] ss:$24 sps:$4 sm:$0xff]   ;;  %v2665_v14 = vld [vmem:[#allocation6 + $0x750] ss:$24 sps:$4 sm:$0xff]   ;;  %v2676_v17 = vld [vmem:[#allocation6 + $0x12c] ss:$24 sps:$4 sm:$0xff]  }
  0x3d   :  { %1878 = vmatprep.subr.bf16.mxu1 %v2606_v25  ;;  %1857 = vmatprep.mubr.bf16.mxu0 %v3131_v59  ;;  %v2668_v15 = vld [vmem:[#allocation6 + $0x158] ss:$24 sps:$4 sm:$0xff]   ;;  %v2673_v16 = vld [vmem:[#allocation6 + $0x724] ss:$24 sps:$4 sm:$0xff]   ;;  %v2674_v19 = vld [vmem:[#allocation6 + $0x128] ss:$24 sps:$4 sm:$0xff]  }
  0x3e   :  { %1898 = vmatprep.mubr.bf16.mxu1 %v3138_v62  ;;  %v2671_v18 = vld [vmem:[#allocation6 + $0x720] ss:$24 sps:$4 sm:$0xff]   ;;  %v2679_v20 = vld [vmem:[#allocation6 + $0x6f4] ss:$24 sps:$4 sm:$0xff]   ;;  %v2677_v22 = vld [vmem:[#allocation6 + $0x6f0] ss:$24 sps:$4 sm:$0xff]  }
  0x3f   :  { %1838 = vmatpush1.bf16.msra.mxu0 %v2608_v26  ;;  %v2682_v21 = vld [vmem:[#allocation6 + $0xfc] ss:$24 sps:$4 sm:$0xff]   ;;  %v2680_v23 = vld [vmem:[#allocation6 + $0xf8] ss:$24 sps:$4 sm:$0xff]   ;;  %v2688_v25 = vld [vmem:[#allocation6 + $0xcc] ss:$24 sps:$4 sm:$0xff]  }
  0x40   :  { %1879 = vmatpush1.bf16.msra.mxu1 %v2609_v27  ;;  %1839 = vmatprep.subr.bf16.mxu0 %v2610_v28  ;;  %v2685_v24 = vld [vmem:[#allocation6 + $0x6c4] ss:$24 sps:$4 sm:$0xff]   ;;  %v2683_v26 = vld [vmem:[#allocation6 + $0x6c0] ss:$24 sps:$4 sm:$0xff]   ;;  %v2691_v28 = vld [vmem:[#allocation6 + $0x694] ss:$24 sps:$4 sm:$0xff]  }
  0x41   :  { %1880 = vmatprep.subr.bf16.mxu1 %v2612_v29  ;;  %v2686_v27 = vld [vmem:[#allocation6 + $0xc8] ss:$24 sps:$4 sm:$0xff]   ;;  %v2694_v29 = vld [vmem:[#allocation6 + $0x9c] ss:$24 sps:$4 sm:$0xff]   ;;  %v2724_v52 = vld [vmem:[#allocation6 + $0x2ac] ss:$24 sps:$4 sm:$0xff]  }
  0x42   :  { %v2703_v36 = vld [vmem:[#allocation6 + $0x634] ss:$24 sps:$4 sm:$0xff]   ;;  %v3144_v38 = vld.sshfl [vmem:[#allocation3 + $0x8] sm:$0x33 pattern:$0x76325410] }
  0x43   :  { %1840 = vmatpush1.bf16.msra.mxu0 %v2614_v30  ;;  %v2689_v30 = vld [vmem:[#allocation6 + $0x690] ss:$24 sps:$4 sm:$0xff]   ;;  %v2706_v37 = vld [vmem:[#allocation6 + $0x3c] ss:$24 sps:$4 sm:$0xff]   ;;  %s3062_s28 = scalar_lea.vmem %s2263_s2, 384 }
  0x44   :  { %1881 = vmatpush1.bf16.msra.mxu1 %v2615_v31  ;;  %1841 = vmatprep.subr.bf16.mxu0 %v2616_v32  ;;  %v2692_v31 = vld [vmem:[#allocation6 + $0x98] ss:$24 sps:$4 sm:$0xff]   ;;  %v2697_v32 = vld [vmem:[#allocation6 + $0x664] ss:$24 sps:$4 sm:$0xff]   ;;  %v2722_v55 = vld [vmem:[#allocation6 + $0x2a8] ss:$24 sps:$4 sm:$0xff]   ;;  %p3063_p1 = scmp.ne.s32.totalorder %s2263_s2, %s3062_s28  ;;  %p3068_p3 = scmp.lt.s32.totalorder %s3062_s28, %s3062_s28 }
  0x45   :  { %1882 = vmatprep.subr.bf16.mxu1 %v2618_v33  ;;  %v2700_v33 = vld [vmem:[#allocation6 + $0x6c] ss:$24 sps:$4 sm:$0xff]   ;;  %v2713_v49 = vld [vmem:[#allocation6 + $0x8d0] ss:$24 sps:$4 sm:$0xff]  }
  0x46   :  { %v2709_v42 = vld [vmem:[#allocation6 + $0x604] ss:$24 sps:$4 sm:$0xff]   ;;  %p3069_p4 = por %p3068_p3, %p3067_p2 }
  0x47   :  { %1842 = vmatpush2.bf16.msra.mxu0 %v2620_v34  ;;  %v2695_v34 = vld [vmem:[#allocation6 + $0x660] ss:$24 sps:$4 sm:$0xff]  }
  0x48   :  { %1883 = vmatpush2.bf16.msra.mxu1 %v2621_v35  ;;  %1843 = vmatprep.subr.bf16.mxu0 %v2622_v39  ;;  %v2698_v35 = vld [vmem:[#allocation6 + $0x68] ss:$24 sps:$4 sm:$0xff]   ;;  %v3148_v39 = vcombine.high %v3144_v38, %v3144_v38  ;;  %p3070_p5 = pnand %p3069_p4, %p3063_p1 }
  0x49   :  { %1884 = vmatprep.subr.bf16.mxu1 %v2624_v40  ;;  %v2701_v40 = vld [vmem:[#allocation6 + $0x630] ss:$24 sps:$4 sm:$0xff]  }
  0x4b   :  { %1844 = vmatpush2.bf16.msra.mxu0 %v2626_v41  ;;  %v2704_v41 = vld [vmem:[#allocation6 + $0x38] ss:$24 sps:$4 sm:$0xff]  }
  0x4c   :  { %1885 = vmatpush2.bf16.msra.mxu1 %v2627_v44  ;;  %1845 = vmatprep.subr.bf16.mxu0 %v2628_v45  ;;  %v2712_v44 = vld [vmem:[#allocation6 + $0xc] ss:$24 sps:$4 sm:$0xff]   ;;  %v2707_v45 = vld [vmem:[#allocation6 + $0x600] ss:$24 sps:$4 sm:$0xff]  }
  0x4d   :  { %1886 = vmatprep.subr.bf16.mxu1 %v2630_v46  ;;  %v2710_v46 = vld [vmem:[#allocation6 + $0x8] ss:$24 sps:$4 sm:$0xff]  }
  0x4f   :  { %1846 = vmatpush2.bf16.msra.mxu0 %v2632_v47  ;;  %v2715_v47 = vld [vmem:[#allocation6 + $0x8d4] ss:$24 sps:$4 sm:$0xff]  }
  0x50   :  { %1887 = vmatpush2.bf16.msra.mxu1 %v2633_v48  ;;  %1847 = vmatprep.subr.bf16.mxu0 %v2634_v50  ;;  %v2718_v48 = vld [vmem:[#allocation6 + $0x2dc] ss:$24 sps:$4 sm:$0xff]   ;;  %v2716_v50 = vld [vmem:[#allocation6 + $0x2d8] ss:$24 sps:$4 sm:$0xff]  }
  0x51   :  { %1888 = vmatprep.subr.bf16.mxu1 %v2636_v51  ;;  %v2721_v51 = vld [vmem:[#allocation6 + $0x8a4] ss:$24 sps:$4 sm:$0xff]  }
  0x53   :  { %1848 = vmatpush2.bf16.msra.mxu0 %v2638_v53  ;;  %v2719_v53 = vld [vmem:[#allocation6 + $0x8a0] ss:$24 sps:$4 sm:$0xff]  }
  0x54   :  { %1889 = vmatpush2.bf16.msra.mxu1 %v2639_v56  ;;  %1849 = vmatprep.subr.bf16.mxu0 %v2640_v57  ;;  %v2727_v56 = vld [vmem:[#allocation6 + $0x874] ss:$24 sps:$4 sm:$0xff]  }
  0x55   :  { %1890 = vmatprep.subr.bf16.mxu1 %v2642_v58  ;;  %v2730_v57 = vld [vmem:[#allocation6 + $0x27c] ss:$24 sps:$4 sm:$0xff]   ;;  %v2725_v58 = vld [vmem:[#allocation6 + $0x870] ss:$24 sps:$4 sm:$0xff]  }
  0x57   :  { %1850 = vmatpush2.bf16.msra.mxu0 %v2644_v61  ;;  %v2728_v61 = vld [vmem:[#allocation6 + $0x278] ss:$24 sps:$4 sm:$0xff]  }
  0x58   :  { %1891 = vmatpush2.bf16.msra.mxu1 %v2645_v63  ;;  %1851 = vmatprep.subr.bf16.mxu0 %v2646_v0  ;;  %v2733_v63 = vld [vmem:[#allocation6 + $0x844] ss:$24 sps:$4 sm:$0xff]  }
  0x59   :  { %1892 = vmatprep.subr.bf16.mxu1 %v2648_v1  ;;  %v2736_v0 = vld [vmem:[#allocation6 + $0x24c] ss:$24 sps:$4 sm:$0xff]   ;;  %v2731_v1 = vld [vmem:[#allocation6 + $0x840] ss:$24 sps:$4 sm:$0xff]  }
  0x5b   :  { %1852 = vmatpush2.bf16.msra.mxu0 %v2650_v2  ;;  %v2734_v2 = vld [vmem:[#allocation6 + $0x248] ss:$24 sps:$4 sm:$0xff]  }
  0x5c   :  { %1893 = vmatpush2.bf16.msra.mxu1 %v2651_v3  ;;  %1853 = vmatprep.subr.bf16.mxu0 %v2652_v4  ;;  %v2739_v3 = vld [vmem:[#allocation6 + $0x814] ss:$24 sps:$4 sm:$0xff]  }
  0x5d   :  { %1894 = vmatprep.subr.bf16.mxu1 %v2654_v5  ;;  %v2742_v4 = vld [vmem:[#allocation6 + $0x21c] ss:$24 sps:$4 sm:$0xff]   ;;  %v2737_v5 = vld [vmem:[#allocation6 + $0x810] ss:$24 sps:$4 sm:$0xff]  }
  0x5f   :  { %1854 = vmatpush2.bf16.msra.mxu0 %v2656_v6  ;;  %v2740_v6 = vld [vmem:[#allocation6 + $0x218] ss:$24 sps:$4 sm:$0xff]  }
  0x60   :  { %1895 = vmatpush2.bf16.msra.mxu1 %v2657_v7  ;;  %1855 = vmatprep.subr.bf16.mxu0 %v2658_v8  ;;  %v2745_v7 = vld [vmem:[#allocation6 + $0x7e4] ss:$24 sps:$4 sm:$0xff]  }
  0x61   :  { %1896 = vmatprep.subr.bf16.mxu1 %v2660_v9  ;;  %v2748_v8 = vld [vmem:[#allocation6 + $0x1ec] ss:$24 sps:$4 sm:$0xff]   ;;  %v2743_v9 = vld [vmem:[#allocation6 + $0x7e0] ss:$24 sps:$4 sm:$0xff]  }
  0x63   :  { %1856 = vmatpush2.bf16.msra.mxu0 %v2662_v10  ;;  %v2746_v10 = vld [vmem:[#allocation6 + $0x1e8] ss:$24 sps:$4 sm:$0xff]  }
  0x64   :  { %1897 = vmatpush2.bf16.msra.mxu1 %v2663_v11  ;;  %1907 = vmatprep.subr.bf16.mxu0 %v2667_v12  ;;  %v2751_v11 = vld [vmem:[#allocation6 + $0x7b4] ss:$24 sps:$4 sm:$0xff]  }
  0x65   :  { %1948 = vmatprep.subr.bf16.mxu1 %v2670_v13  ;;  %v2754_v12 = vld [vmem:[#allocation6 + $0x1bc] ss:$24 sps:$4 sm:$0xff]   ;;  %v2749_v13 = vld [vmem:[#allocation6 + $0x7b0] ss:$24 sps:$4 sm:$0xff]  }
  0x66   :  { %1858 = vmatmul.mubr.bf16.vlgmr.msra.gmra.mxu0 %v3127_v54 }
  0x67   :  { %1899 = vmatmul.mubr.bf16.vlgmr.msra.gmra.mxu1 %v3133_v60  ;;  %1908 = vmatpush1.bf16.msra.mxu0 %v2665_v14  ;;  %v2752_v14 = vld [vmem:[#allocation6 + $0x1b8] ss:$24 sps:$4 sm:$0xff]  }
  0x68   :  { %1949 = vmatpush1.bf16.msra.mxu1 %v2668_v15  ;;  %1909 = vmatprep.subr.bf16.mxu0 %v2673_v16  ;;  %v2757_v15 = vld [vmem:[#allocation6 + $0x784] ss:$24 sps:$4 sm:$0xff]  }
  0x69   :  { %1950 = vmatprep.subr.bf16.mxu1 %v2676_v17  ;;  %1980 = vmatprep.mubr.bf16.mxu1 %v3131_v59  ;;  %v2760_v16 = vld [vmem:[#allocation6 + $0x18c] ss:$24 sps:$4 sm:$0xff]   ;;  %v2755_v17 = vld [vmem:[#allocation6 + $0x780] ss:$24 sps:$4 sm:$0xff]  }
  0x6a   :  { %1939 = vmatprep.mubr.bf16.mxu0 %v3148_v39 }
  0x6b   :  { %1910 = vmatpush1.bf16.msra.mxu0 %v2671_v18  ;;  %v2758_v18 = vld [vmem:[#allocation6 + $0x188] ss:$24 sps:$4 sm:$0xff]  }
  0x6c   :  { %1951 = vmatpush1.bf16.msra.mxu1 %v2674_v19  ;;  %1911 = vmatprep.subr.bf16.mxu0 %v2679_v20  ;;  %v2763_v19 = vld [vmem:[#allocation6 + $0x45c] ss:$24 sps:$4 sm:$0xff]  }
  0x6d   :  { %1952 = vmatprep.subr.bf16.mxu1 %v2682_v21  ;;  %v2766_v20 = vld [vmem:[#allocation6 + $0x75c] ss:$24 sps:$4 sm:$0xff]   ;;  %v2761_v21 = vld [vmem:[#allocation6 + $0x458] ss:$24 sps:$4 sm:$0xff]  }
  0x6f   :  { %1912 = vmatpush1.bf16.msra.mxu0 %v2677_v22  ;;  %v2764_v22 = vld [vmem:[#allocation6 + $0x758] ss:$24 sps:$4 sm:$0xff]  }
  0x70   :  { %1953 = vmatpush1.bf16.msra.mxu1 %v2680_v23  ;;  %1913 = vmatprep.subr.bf16.mxu0 %v2685_v24  ;;  %v2769_v23 = vld [vmem:[#allocation6 + $0x42c] ss:$24 sps:$4 sm:$0xff]  }
  0x71   :  { %1954 = vmatprep.subr.bf16.mxu1 %v2688_v25  ;;  %v2772_v24 = vld [vmem:[#allocation6 + $0x72c] ss:$24 sps:$4 sm:$0xff]   ;;  %v2767_v25 = vld [vmem:[#allocation6 + $0x428] ss:$24 sps:$4 sm:$0xff]  }
  0x73   :  { %1914 = vmatpush1.bf16.msra.mxu0 %v2683_v26  ;;  %v2770_v26 = vld [vmem:[#allocation6 + $0x728] ss:$24 sps:$4 sm:$0xff]  }
  0x74   :  { %1955 = vmatpush1.bf16.msra.mxu1 %v2686_v27  ;;  %1915 = vmatprep.subr.bf16.mxu0 %v2691_v28  ;;  %v2775_v27 = vld [vmem:[#allocation6 + $0x3fc] ss:$24 sps:$4 sm:$0xff]  }
  0x75   :  { %1956 = vmatprep.subr.bf16.mxu1 %v2694_v29  ;;  %v2778_v28 = vld [vmem:[#allocation6 + $0x6fc] ss:$24 sps:$4 sm:$0xff]   ;;  %v2773_v29 = vld [vmem:[#allocation6 + $0x3f8] ss:$24 sps:$4 sm:$0xff]  }
  0x77   :  { %1916 = vmatpush1.bf16.msra.mxu0 %v2689_v30  ;;  %v2776_v30 = vld [vmem:[#allocation6 + $0x6f8] ss:$24 sps:$4 sm:$0xff]  }
  0x78   :  { %1957 = vmatpush1.bf16.msra.mxu1 %v2692_v31  ;;  %1917 = vmatprep.subr.bf16.mxu0 %v2697_v32  ;;  %v2781_v31 = vld [vmem:[#allocation6 + $0x3cc] ss:$24 sps:$4 sm:$0xff]  }
  0x79   :  { %1958 = vmatprep.subr.bf16.mxu1 %v2700_v33  ;;  %v2784_v32 = vld [vmem:[#allocation6 + $0x6cc] ss:$24 sps:$4 sm:$0xff]   ;;  %v2779_v33 = vld [vmem:[#allocation6 + $0x3c8] ss:$24 sps:$4 sm:$0xff]  }
  0x7b   :  { %1918 = vmatpush1.bf16.msra.mxu0 %v2695_v34  ;;  %v2782_v34 = vld [vmem:[#allocation6 + $0x6c8] ss:$24 sps:$4 sm:$0xff]  }
  0x7c   :  { %1959 = vmatpush1.bf16.msra.mxu1 %v2698_v35  ;;  %1919 = vmatprep.subr.bf16.mxu0 %v2703_v36  ;;  %v2787_v35 = vld [vmem:[#allocation6 + $0x39c] ss:$24 sps:$4 sm:$0xff]  }
  0x7d   :  { %1960 = vmatprep.subr.bf16.mxu1 %v2706_v37  ;;  %v2790_v36 = vld [vmem:[#allocation6 + $0x69c] ss:$24 sps:$4 sm:$0xff]   ;;  %v2785_v37 = vld [vmem:[#allocation6 + $0x398] ss:$24 sps:$4 sm:$0xff]  }
  0x7f   :  { %1920 = vmatpush1.bf16.msra.mxu0 %v2701_v40  ;;  %v2788_v40 = vld [vmem:[#allocation6 + $0x698] ss:$24 sps:$4 sm:$0xff]  }
  0x80   :  { %1961 = vmatpush1.bf16.msra.mxu1 %v2704_v41  ;;  %1921 = vmatprep.subr.bf16.mxu0 %v2709_v42  ;;  %v2793_v41 = vld [vmem:[#allocation6 + $0x36c] ss:$24 sps:$4 sm:$0xff]  }
  0x81   :  { %1962 = vmatprep.subr.bf16.mxu1 %v2712_v44  ;;  %v2796_v42 = vld [vmem:[#allocation6 + $0x66c] ss:$24 sps:$4 sm:$0xff]   ;;  %v2791_v44 = vld [vmem:[#allocation6 + $0x368] ss:$24 sps:$4 sm:$0xff]  }
  0x83   :  { %1922 = vmatpush1.bf16.msra.mxu0 %v2707_v45  ;;  %v2794_v45 = vld [vmem:[#allocation6 + $0x668] ss:$24 sps:$4 sm:$0xff]  }
  0x84   :  { %1963 = vmatpush1.bf16.msra.mxu1 %v2710_v46  ;;  %1923 = vmatprep.subr.bf16.mxu0 %v2715_v47  ;;  %v2799_v46 = vld [vmem:[#allocation6 + $0x33c] ss:$24 sps:$4 sm:$0xff]  }
  0x85   :  { %1964 = vmatprep.subr.bf16.mxu1 %v2718_v48  ;;  %v2802_v47 = vld [vmem:[#allocation6 + $0x63c] ss:$24 sps:$4 sm:$0xff]   ;;  %v2797_v48 = vld [vmem:[#allocation6 + $0x338] ss:$24 sps:$4 sm:$0xff]  }
  0x87   :  { %1924 = vmatpush2.bf16.msra.mxu0 %v2713_v49  ;;  %v2800_v49 = vld [vmem:[#allocation6 + $0x638] ss:$24 sps:$4 sm:$0xff]  }
  0x88   :  { %1965 = vmatpush2.bf16.msra.mxu1 %v2716_v50  ;;  %1925 = vmatprep.subr.bf16.mxu0 %v2721_v51  ;;  %v2805_v50 = vld [vmem:[#allocation6 + $0x30c] ss:$24 sps:$4 sm:$0xff]  }
  0x89   :  { %1966 = vmatprep.subr.bf16.mxu1 %v2724_v52  ;;  %v2808_v51 = vld [vmem:[#allocation6 + $0x60c] ss:$24 sps:$4 sm:$0xff]   ;;  %v2803_v52 = vld [vmem:[#allocation6 + $0x308] ss:$24 sps:$4 sm:$0xff]  }
  0x8b   :  { %1926 = vmatpush2.bf16.msra.mxu0 %v2719_v53  ;;  %v2806_v53 = vld [vmem:[#allocation6 + $0x608] ss:$24 sps:$4 sm:$0xff]  }
  0x8c   :  { %1967 = vmatpush2.bf16.msra.mxu1 %v2722_v55  ;;  %1927 = vmatprep.subr.bf16.mxu0 %v2727_v56  ;;  %v2811_v55 = vld [vmem:[#allocation6 + $0x5dc] ss:$24 sps:$4 sm:$0xff]  }
  0x8d   :  { %1968 = vmatprep.subr.bf16.mxu1 %v2730_v57  ;;  %v2814_v56 = vld [vmem:[#allocation6 + $0x8dc] ss:$24 sps:$4 sm:$0xff]   ;;  %v2809_v57 = vld [vmem:[#allocation6 + $0x5d8] ss:$24 sps:$4 sm:$0xff]  }
  0x8f   :  { %1928 = vmatpush2.bf16.msra.mxu0 %v2725_v58  ;;  %v2812_v58 = vld [vmem:[#allocation6 + $0x8d8] ss:$24 sps:$4 sm:$0xff]  }
  0x90   :  { %1969 = vmatpush2.bf16.msra.mxu1 %v2728_v61  ;;  %1929 = vmatprep.subr.bf16.mxu0 %v2733_v63  ;;  %v2817_v61 = vld [vmem:[#allocation6 + $0x5ac] ss:$24 sps:$4 sm:$0xff]  }
  0x91   :  { %1970 = vmatprep.subr.bf16.mxu1 %v2736_v0  ;;  %v2820_v63 = vld [vmem:[#allocation6 + $0x8ac] ss:$24 sps:$4 sm:$0xff]   ;;  %v2815_v0 = vld [vmem:[#allocation6 + $0x5a8] ss:$24 sps:$4 sm:$0xff]  }
  0x93   :  { %1930 = vmatpush2.bf16.msra.mxu0 %v2731_v1  ;;  %v2818_v1 = vld [vmem:[#allocation6 + $0x8a8] ss:$24 sps:$4 sm:$0xff]  }
  0x94   :  { %1971 = vmatpush2.bf16.msra.mxu1 %v2734_v2  ;;  %1931 = vmatprep.subr.bf16.mxu0 %v2739_v3  ;;  %v2823_v2 = vld [vmem:[#allocation6 + $0x57c] ss:$24 sps:$4 sm:$0xff]  }
  0x95   :  { %1972 = vmatprep.subr.bf16.mxu1 %v2742_v4  ;;  %v2826_v3 = vld [vmem:[#allocation6 + $0x87c] ss:$24 sps:$4 sm:$0xff]   ;;  %v2821_v4 = vld [vmem:[#allocation6 + $0x578] ss:$24 sps:$4 sm:$0xff]  }
  0x97   :  { %1932 = vmatpush2.bf16.msra.mxu0 %v2737_v5  ;;  %v2824_v5 = vld [vmem:[#allocation6 + $0x878] ss:$24 sps:$4 sm:$0xff]  }
  0x98   :  { %1973 = vmatpush2.bf16.msra.mxu1 %v2740_v6  ;;  %1933 = vmatprep.subr.bf16.mxu0 %v2745_v7  ;;  %v2829_v6 = vld [vmem:[#allocation6 + $0x54c] ss:$24 sps:$4 sm:$0xff]  }
  0x99   :  { %1974 = vmatprep.subr.bf16.mxu1 %v2748_v8  ;;  %v2832_v7 = vld [vmem:[#allocation6 + $0x84c] ss:$24 sps:$4 sm:$0xff]   ;;  %v2827_v8 = vld [vmem:[#allocation6 + $0x548] ss:$24 sps:$4 sm:$0xff]  }
  0x9b   :  { %1934 = vmatpush2.bf16.msra.mxu0 %v2743_v9  ;;  %v2830_v9 = vld [vmem:[#allocation6 + $0x848] ss:$24 sps:$4 sm:$0xff]  }
  0x9c   :  { %1975 = vmatpush2.bf16.msra.mxu1 %v2746_v10  ;;  %1935 = vmatprep.subr.bf16.mxu0 %v2751_v11  ;;  %v2835_v10 = vld [vmem:[#allocation6 + $0x51c] ss:$24 sps:$4 sm:$0xff]  }
  0x9d   :  { %1976 = vmatprep.subr.bf16.mxu1 %v2754_v12  ;;  %v2838_v11 = vld [vmem:[#allocation6 + $0x81c] ss:$24 sps:$4 sm:$0xff]   ;;  %v2833_v12 = vld [vmem:[#allocation6 + $0x518] ss:$24 sps:$4 sm:$0xff]  }
  0x9f   :  { %1936 = vmatpush2.bf16.msra.mxu0 %v2749_v13  ;;  %v2836_v13 = vld [vmem:[#allocation6 + $0x818] ss:$24 sps:$4 sm:$0xff]  }
  0xa0   :  { %1977 = vmatpush2.bf16.msra.mxu1 %v2752_v14  ;;  %1937 = vmatprep.subr.bf16.mxu0 %v2757_v15  ;;  %v2841_v14 = vld [vmem:[#allocation6 + $0x4ec] ss:$24 sps:$4 sm:$0xff]  }
  0xa1   :  { %1978 = vmatprep.subr.bf16.mxu1 %v2760_v16  ;;  %v2844_v15 = vld [vmem:[#allocation6 + $0x7ec] ss:$24 sps:$4 sm:$0xff]   ;;  %v2839_v16 = vld [vmem:[#allocation6 + $0x4e8] ss:$24 sps:$4 sm:$0xff]  }
  0xa3   :  { %1938 = vmatpush2.bf16.msra.mxu0 %v2755_v17  ;;  %v2842_v17 = vld [vmem:[#allocation6 + $0x7e8] ss:$24 sps:$4 sm:$0xff]  }
  0xa4   :  { %1979 = vmatpush2.bf16.msra.mxu1 %v2758_v18  ;;  %1989 = vmatprep.subr.bf16.mxu0 %v2763_v19  ;;  %v2847_v18 = vld [vmem:[#allocation6 + $0x4bc] ss:$24 sps:$4 sm:$0xff]  }
  0xa5   :  { %2030 = vmatprep.subr.bf16.mxu1 %v2766_v20  ;;  %v2850_v19 = vld [vmem:[#allocation6 + $0x7bc] ss:$24 sps:$4 sm:$0xff]   ;;  %v2845_v20 = vld [vmem:[#allocation6 + $0x4b8] ss:$24 sps:$4 sm:$0xff]  }
  0xa6   :  { %1940 = vmatmul.mubr.bf16.vlgmr.msra.gmra.mxu0 %v3144_v38 }
  0xa7   :  { %1981 = vmatmul.mubr.bf16.vlgmr.msra.gmra.mxu1 %v3127_v54  ;;  %1990 = vmatpush1.bf16.msra.mxu0 %v2761_v21  ;;  %v2848_v21 = vld [vmem:[#allocation6 + $0x7b8] ss:$24 sps:$4 sm:$0xff]  }
  0xa8   :  { %2031 = vmatpush1.bf16.msra.mxu1 %v2764_v22  ;;  %1991 = vmatprep.subr.bf16.mxu0 %v2769_v23  ;;  %v2853_v22 = vld [vmem:[#allocation6 + $0x48c] ss:$24 sps:$4 sm:$0xff]  }
  0xa9   :  { %2032 = vmatprep.subr.bf16.mxu1 %v2772_v24  ;;  %2021 = vmatprep.mubr.bf16.mxu0 %v3138_v62  ;;  %v2856_v23 = vld [vmem:[#allocation6 + $0x78c] ss:$24 sps:$4 sm:$0xff]   ;;  %v2851_v24 = vld [vmem:[#allocation6 + $0x488] ss:$24 sps:$4 sm:$0xff]  }
  0xaa   :  { %2062 = vmatprep.mubr.bf16.mxu1 %v3148_v39 }
  0xab   :  { %1992 = vmatpush1.bf16.msra.mxu0 %v2767_v25  ;;  %v2854_v25 = vld [vmem:[#allocation6 + $0x788] ss:$24 sps:$4 sm:$0xff]  }
  0xac   :  { %2033 = vmatpush1.bf16.msra.mxu1 %v2770_v26  ;;  %1993 = vmatprep.subr.bf16.mxu0 %v2775_v27  ;;  %v2859_v26 = vld [vmem:[#allocation6 + $0x164] ss:$24 sps:$4 sm:$0xff]  }
  0xad   :  { %2034 = vmatprep.subr.bf16.mxu1 %v2778_v28  ;;  %v2862_v27 = vld [vmem:[#allocation6 + $0x464] ss:$24 sps:$4 sm:$0xff]   ;;  %v2857_v28 = vld [vmem:[#allocation6 + $0x160] ss:$24 sps:$4 sm:$0xff]  }
  0xaf   :  { %1994 = vmatpush1.bf16.msra.mxu0 %v2773_v29  ;;  %v2860_v29 = vld [vmem:[#allocation6 + $0x460] ss:$24 sps:$4 sm:$0xff]  }
  0xb0   :  { %2035 = vmatpush1.bf16.msra.mxu1 %v2776_v30  ;;  %1995 = vmatprep.subr.bf16.mxu0 %v2781_v31  ;;  %v2865_v30 = vld [vmem:[#allocation6 + $0x134] ss:$24 sps:$4 sm:$0xff]  }
  0xb1   :  { %2036 = vmatprep.subr.bf16.mxu1 %v2784_v32  ;;  %v2868_v31 = vld [vmem:[#allocation6 + $0x434] ss:$24 sps:$4 sm:$0xff]   ;;  %v2863_v32 = vld [vmem:[#allocation6 + $0x130] ss:$24 sps:$4 sm:$0xff]  }
  0xb3   :  { %1996 = vmatpush1.bf16.msra.mxu0 %v2779_v33  ;;  %v2866_v33 = vld [vmem:[#allocation6 + $0x430] ss:$24 sps:$4 sm:$0xff]  }
  0xb4   :  { %2037 = vmatpush1.bf16.msra.mxu1 %v2782_v34  ;;  %1997 = vmatprep.subr.bf16.mxu0 %v2787_v35  ;;  %v2871_v34 = vld [vmem:[#allocation6 + $0x104] ss:$24 sps:$4 sm:$0xff]  }
  0xb5   :  { %2038 = vmatprep.subr.bf16.mxu1 %v2790_v36  ;;  %v2874_v35 = vld [vmem:[#allocation6 + $0x404] ss:$24 sps:$4 sm:$0xff]   ;;  %v2869_v36 = vld [vmem:[#allocation6 + $0x100] ss:$24 sps:$4 sm:$0xff]  }
  0xb7   :  { %1998 = vmatpush1.bf16.msra.mxu0 %v2785_v37  ;;  %v2872_v37 = vld [vmem:[#allocation6 + $0x400] ss:$24 sps:$4 sm:$0xff]  }
  0xb8   :  { %2039 = vmatpush1.bf16.msra.mxu1 %v2788_v40  ;;  %1999 = vmatprep.subr.bf16.mxu0 %v2793_v41  ;;  %v2877_v40 = vld [vmem:[#allocation6 + $0xd4] ss:$24 sps:$4 sm:$0xff]   ;;  %v2875_v41 = vld [vmem:[#allocation6 + $0xd0] ss:$24 sps:$4 sm:$0xff]  }
  0xb9   :  { %2040 = vmatprep.subr.bf16.mxu1 %v2796_v42  ;;  %v2878_v42 = vld [vmem:[#allocation6 + $0x3d0] ss:$24 sps:$4 sm:$0xff]  }
  0xbb   :  { %2000 = vmatpush1.bf16.msra.mxu0 %v2791_v44  ;;  %v2883_v44 = vld [vmem:[#allocation6 + $0xa4] ss:$24 sps:$4 sm:$0xff]  }
  0xbc   :  { %2041 = vmatpush1.bf16.msra.mxu1 %v2794_v45  ;;  %2001 = vmatprep.subr.bf16.mxu0 %v2799_v46  ;;  %v2886_v45 = vld [vmem:[#allocation6 + $0x3a4] ss:$24 sps:$4 sm:$0xff]   ;;  %v2889_v46 = vld [vmem:[#allocation6 + $0x74] ss:$24 sps:$4 sm:$0xff]  }
  0xbd   :  { %2042 = vmatprep.subr.bf16.mxu1 %v2802_v47  ;;  %v2892_v47 = vld [vmem:[#allocation6 + $0x374] ss:$24 sps:$4 sm:$0xff]  }
  0xbf   :  { %2002 = vmatpush1.bf16.msra.mxu0 %v2797_v48  ;;  %v2887_v48 = vld [vmem:[#allocation6 + $0x70] ss:$24 sps:$4 sm:$0xff]  }
  0xc0   :  { %2043 = vmatpush1.bf16.msra.mxu1 %v2800_v49  ;;  %2003 = vmatprep.subr.bf16.mxu0 %v2805_v50  ;;  %v2890_v49 = vld [vmem:[#allocation6 + $0x370] ss:$24 sps:$4 sm:$0xff]   ;;  %v2895_v50 = vld [vmem:[#allocation6 + $0x44] ss:$24 sps:$4 sm:$0xff]  }
  0xc1   :  { %2044 = vmatprep.subr.bf16.mxu1 %v2808_v51  ;;  %v2898_v51 = vld [vmem:[#allocation6 + $0x344] ss:$24 sps:$4 sm:$0xff]  }
  0xc3   :  { %2004 = vmatpush1.bf16.msra.mxu0 %v2803_v52  ;;  %v2893_v52 = vld [vmem:[#allocation6 + $0x40] ss:$24 sps:$4 sm:$0xff]  }
  0xc4   :  { %2045 = vmatpush1.bf16.msra.mxu1 %v2806_v53  ;;  %2005 = vmatprep.subr.bf16.mxu0 %v2811_v55  ;;  %v2896_v53 = vld [vmem:[#allocation6 + $0x340] ss:$24 sps:$4 sm:$0xff]   ;;  %v2901_v55 = vld [vmem:[#allocation6 + $0x14] ss:$24 sps:$4 sm:$0xff]  }
  0xc5   :  { %2046 = vmatprep.subr.bf16.mxu1 %v2814_v56  ;;  %v2904_v56 = vld [vmem:[#allocation6 + $0x314] ss:$24 sps:$4 sm:$0xff]  }
  0xc7   :  { %2006 = vmatpush2.bf16.msra.mxu0 %v2809_v57  ;;  %v2899_v57 = vld [vmem:[#allocation6 + $0x10] ss:$24 sps:$4 sm:$0xff]  }
  0xc8   :  { %2047 = vmatpush2.bf16.msra.mxu1 %v2812_v58  ;;  %2007 = vmatprep.subr.bf16.mxu0 %v2817_v61  ;;  %v2902_v58 = vld [vmem:[#allocation6 + $0x310] ss:$24 sps:$4 sm:$0xff]   ;;  %v2907_v61 = vld [vmem:[#allocation6 + $0x2e4] ss:$24 sps:$4 sm:$0xff]  }
  0xc9   :  { %2048 = vmatprep.subr.bf16.mxu1 %v2820_v63  ;;  %v2910_v63 = vld [vmem:[#allocation6 + $0x5e4] ss:$24 sps:$4 sm:$0xff]  }
  0xcb   :  { %2008 = vmatpush2.bf16.msra.mxu0 %v2815_v0  ;;  %v2905_v0 = vld [vmem:[#allocation6 + $0x2e0] ss:$24 sps:$4 sm:$0xff]  }
  0xcc   :  { %2049 = vmatpush2.bf16.msra.mxu1 %v2818_v1  ;;  %2009 = vmatprep.subr.bf16.mxu0 %v2823_v2  ;;  %v2908_v1 = vld [vmem:[#allocation6 + $0x5e0] ss:$24 sps:$4 sm:$0xff]   ;;  %v2913_v2 = vld [vmem:[#allocation6 + $0x2b4] ss:$24 sps:$4 sm:$0xff]  }
  0xcd   :  { %2050 = vmatprep.subr.bf16.mxu1 %v2826_v3  ;;  %v2916_v3 = vld [vmem:[#allocation6 + $0x5b4] ss:$24 sps:$4 sm:$0xff]  }
  0xcf   :  { %2010 = vmatpush2.bf16.msra.mxu0 %v2821_v4  ;;  %v2911_v4 = vld [vmem:[#allocation6 + $0x2b0] ss:$24 sps:$4 sm:$0xff]  }
  0xd0   :  { %2051 = vmatpush2.bf16.msra.mxu1 %v2824_v5  ;;  %2011 = vmatprep.subr.bf16.mxu0 %v2829_v6  ;;  %v2914_v5 = vld [vmem:[#allocation6 + $0x5b0] ss:$24 sps:$4 sm:$0xff]   ;;  %v2919_v6 = vld [vmem:[#allocation6 + $0x284] ss:$24 sps:$4 sm:$0xff]  }
  0xd1   :  { %2052 = vmatprep.subr.bf16.mxu1 %v2832_v7  ;;  %v2922_v7 = vld [vmem:[#allocation6 + $0x584] ss:$24 sps:$4 sm:$0xff]  }
  0xd3   :  { %2012 = vmatpush2.bf16.msra.mxu0 %v2827_v8  ;;  %v2917_v8 = vld [vmem:[#allocation6 + $0x280] ss:$24 sps:$4 sm:$0xff]  }
  0xd4   :  { %2053 = vmatpush2.bf16.msra.mxu1 %v2830_v9  ;;  %2013 = vmatprep.subr.bf16.mxu0 %v2835_v10  ;;  %v2920_v9 = vld [vmem:[#allocation6 + $0x580] ss:$24 sps:$4 sm:$0xff]   ;;  %v2925_v10 = vld [vmem:[#allocation6 + $0x254] ss:$24 sps:$4 sm:$0xff]  }
  0xd5   :  { %2054 = vmatprep.subr.bf16.mxu1 %v2838_v11  ;;  %v2928_v11 = vld [vmem:[#allocation6 + $0x554] ss:$24 sps:$4 sm:$0xff]  }
  0xd7   :  { %2014 = vmatpush2.bf16.msra.mxu0 %v2833_v12  ;;  %v2923_v12 = vld [vmem:[#allocation6 + $0x250] ss:$24 sps:$4 sm:$0xff]  }
  0xd8   :  { %2055 = vmatpush2.bf16.msra.mxu1 %v2836_v13  ;;  %2015 = vmatprep.subr.bf16.mxu0 %v2841_v14  ;;  %v2926_v13 = vld [vmem:[#allocation6 + $0x550] ss:$24 sps:$4 sm:$0xff]   ;;  %v2931_v14 = vld [vmem:[#allocation6 + $0x224] ss:$24 sps:$4 sm:$0xff]  }
  0xd9   :  { %2056 = vmatprep.subr.bf16.mxu1 %v2844_v15  ;;  %v2934_v15 = vld [vmem:[#allocation6 + $0x524] ss:$24 sps:$4 sm:$0xff]  }
  0xdb   :  { %2016 = vmatpush2.bf16.msra.mxu0 %v2839_v16  ;;  %v2929_v16 = vld [vmem:[#allocation6 + $0x220] ss:$24 sps:$4 sm:$0xff]  }
  0xdc   :  { %2057 = vmatpush2.bf16.msra.mxu1 %v2842_v17  ;;  %2017 = vmatprep.subr.bf16.mxu0 %v2847_v18  ;;  %v2932_v17 = vld [vmem:[#allocation6 + $0x520] ss:$24 sps:$4 sm:$0xff]   ;;  %v2937_v18 = vld [vmem:[#allocation6 + $0x1f4] ss:$24 sps:$4 sm:$0xff]  }
  0xdd   :  { %2058 = vmatprep.subr.bf16.mxu1 %v2850_v19  ;;  %v2940_v19 = vld [vmem:[#allocation6 + $0x4f4] ss:$24 sps:$4 sm:$0xff]  }
  0xdf   :  { %2018 = vmatpush2.bf16.msra.mxu0 %v2845_v20  ;;  %v2935_v20 = vld [vmem:[#allocation6 + $0x1f0] ss:$24 sps:$4 sm:$0xff]  }
  0xe0   :  { %2059 = vmatpush2.bf16.msra.mxu1 %v2848_v21  ;;  %2019 = vmatprep.subr.bf16.mxu0 %v2853_v22  ;;  %v2938_v21 = vld [vmem:[#allocation6 + $0x4f0] ss:$24 sps:$4 sm:$0xff]   ;;  %v2943_v22 = vld [vmem:[#allocation6 + $0x1c4] ss:$24 sps:$4 sm:$0xff]  }
  0xe1   :  { %2060 = vmatprep.subr.bf16.mxu1 %v2856_v23  ;;  %v2946_v23 = vld [vmem:[#allocation6 + $0x4c4] ss:$24 sps:$4 sm:$0xff]  }
  0xe3   :  { %2020 = vmatpush2.bf16.msra.mxu0 %v2851_v24  ;;  %v2941_v24 = vld [vmem:[#allocation6 + $0x1c0] ss:$24 sps:$4 sm:$0xff]  }
  0xe4   :  { %2061 = vmatpush2.bf16.msra.mxu1 %v2854_v25  ;;  %2071 = vmatprep.subr.bf16.mxu0 %v2859_v26  ;;  %v2944_v25 = vld [vmem:[#allocation6 + $0x4c0] ss:$24 sps:$4 sm:$0xff]   ;;  %v2949_v26 = vld [vmem:[#allocation6 + $0x194] ss:$24 sps:$4 sm:$0xff]  }
  0xe5   :  { %2112 = vmatprep.subr.bf16.mxu1 %v2862_v27  ;;  %v2952_v27 = vld [vmem:[#allocation6 + $0x494] ss:$24 sps:$4 sm:$0xff]  }
  0xe6   :  { %2022 = vmatmul.mubr.bf16.vlgmr.msra.gmra.mxu0 %v3133_v60 }
  0xe7   :  { %2063 = vmatmul.mubr.bf16.vlgmr.msra.gmra.mxu1 %v3144_v38  ;;  %2072 = vmatpush1.bf16.msra.mxu0 %v2857_v28  ;;  %v2880_v38 = vld [vmem:[#allocation6 + $0x3d4] ss:$24 sps:$4 sm:$0xff]   ;;  %v2947_v28 = vld [vmem:[#allocation6 + $0x190] ss:$24 sps:$4 sm:$0xff]  }
  0xe8   :  { %2113 = vmatpush1.bf16.msra.mxu1 %v2860_v29  ;;  %2073 = vmatprep.subr.bf16.mxu0 %v2865_v30  ;;  %v2950_v29 = vld [vmem:[#allocation6 + $0x490] ss:$24 sps:$4 sm:$0xff]   ;;  %v2955_v30 = vld [vmem:[#allocation6 + $0x764] ss:$24 sps:$4 sm:$0xff]  }
  0xe9   :  { %2114 = vmatprep.subr.bf16.mxu1 %v2868_v31  ;;  %2103 = vmatprep.mubr.bf16.mxu0 %v3131_v59  ;;  %v2881_v59 = vld [vmem:[#allocation6 + $0xa0] ss:$24 sps:$4 sm:$0xff]  }
  0xea   :  { %2144 = vmatprep.mubr.bf16.mxu1 %v3138_v62  ;;  %v2884_v62 = vld [vmem:[#allocation6 + $0x3a0] ss:$24 sps:$4 sm:$0xff]  }
  0xeb   :  { %2074 = vmatpush1.bf16.msra.mxu0 %v2863_v32  ;;  %v2953_v31 = vld [vmem:[#allocation6 + $0x760] ss:$24 sps:$4 sm:$0xff]   ;;  %v2958_v32 = vld [vmem:[#allocation6 + $0x734] ss:$24 sps:$4 sm:$0xff]  }
  0xec   :  { %2115 = vmatpush1.bf16.msra.mxu1 %v2866_v33  ;;  %2075 = vmatprep.subr.bf16.mxu0 %v2871_v34 }
  0xed   :  { %2116 = vmatprep.subr.bf16.mxu1 %v2874_v35 }
  0xef   :  { %2076 = vmatpush1.bf16.msra.mxu0 %v2869_v36  ;;  %v2956_v36 = vld [vmem:[#allocation6 + $0x730] ss:$24 sps:$4 sm:$0xff]  }
  0xf0   :  { %2117 = vmatpush1.bf16.msra.mxu1 %v2872_v37  ;;  %2077 = vmatprep.subr.bf16.mxu0 %v2877_v40 }
  0xf1   :  { %2118 = vmatprep.subr.bf16.mxu1 %v2880_v38  ;;  %v2961_v38 = vld [vmem:[#allocation6 + $0x704] ss:$24 sps:$4 sm:$0xff]  }
  0xf3   :  { %2078 = vmatpush1.bf16.msra.mxu0 %v2875_v41 }
  0xf4   :  { %2119 = vmatpush1.bf16.msra.mxu1 %v2878_v42  ;;  %2079 = vmatprep.subr.bf16.mxu0 %v2883_v44  ;;  %v2959_v44 = vld [vmem:[#allocation6 + $0x700] ss:$24 sps:$4 sm:$0xff]  }
  0xf5   :  { %2120 = vmatprep.subr.bf16.mxu1 %v2886_v45 }
  0xf7   :  { %2080 = vmatpush1.bf16.msra.mxu0 %v2881_v59  ;;  %v2962_v59 = vld [vmem:[#allocation6 + $0x6d0] ss:$24 sps:$4 sm:$0xff]  }
  0xf8   :  { %2121 = vmatpush1.bf16.msra.mxu1 %v2884_v62  ;;  %2081 = vmatprep.subr.bf16.mxu0 %v2889_v46  ;;  %v2967_v62 = vld [vmem:[#allocation6 + $0x6a4] ss:$24 sps:$4 sm:$0xff]   ;;  %v2970_v46 = vld [vmem:[#allocation6 + $0x674] ss:$24 sps:$4 sm:$0xff]  }
  0xf9   :  { %2122 = vmatprep.subr.bf16.mxu1 %v2892_v47  ;;  %v2968_v47 = vld [vmem:[#allocation6 + $0x670] ss:$24 sps:$4 sm:$0xff]  }
  0xfb   :  { %2082 = vmatpush1.bf16.msra.mxu0 %v2887_v48  ;;  %v2973_v48 = vld [vmem:[#allocation6 + $0x644] ss:$24 sps:$4 sm:$0xff]  }
  0xfc   :  { %2123 = vmatpush1.bf16.msra.mxu1 %v2890_v49  ;;  %2083 = vmatprep.subr.bf16.mxu0 %v2895_v50  ;;  %v2971_v49 = vld [vmem:[#allocation6 + $0x640] ss:$24 sps:$4 sm:$0xff]   ;;  %v2976_v50 = vld [vmem:[#allocation6 + $0x614] ss:$24 sps:$4 sm:$0xff]  }
  0xfd   :  { %2124 = vmatprep.subr.bf16.mxu1 %v2898_v51  ;;  %v2974_v51 = vld [vmem:[#allocation6 + $0x610] ss:$24 sps:$4 sm:$0xff]  }
  0xff   :  { %2084 = vmatpush1.bf16.msra.mxu0 %v2893_v52  ;;  %v2979_v52 = vld [vmem:[#allocation6 + $0x8e4] ss:$24 sps:$4 sm:$0xff]  }
 0x100   :  { %2125 = vmatpush1.bf16.msra.mxu1 %v2896_v53  ;;  %2085 = vmatprep.subr.bf16.mxu0 %v2901_v55  ;;  %v2977_v53 = vld [vmem:[#allocation6 + $0x8e0] ss:$24 sps:$4 sm:$0xff]   ;;  %v2982_v55 = vld [vmem:[#allocation6 + $0x8b4] ss:$24 sps:$4 sm:$0xff]  }
 0x101   :  { %2126 = vmatprep.subr.bf16.mxu1 %v2904_v56  ;;  %v2980_v56 = vld [vmem:[#allocation6 + $0x8b0] ss:$24 sps:$4 sm:$0xff]  }
 0x103   :  { %2086 = vmatpush1.bf16.msra.mxu0 %v2899_v57  ;;  %v2985_v57 = vld [vmem:[#allocation6 + $0x884] ss:$24 sps:$4 sm:$0xff]  }
 0x104   :  { %2127 = vmatpush1.bf16.msra.mxu1 %v2902_v58  ;;  %2087 = vmatprep.subr.bf16.mxu0 %v2907_v61  ;;  %v2983_v58 = vld [vmem:[#allocation6 + $0x880] ss:$24 sps:$4 sm:$0xff]   ;;  %v2988_v61 = vld [vmem:[#allocation6 + $0x854] ss:$24 sps:$4 sm:$0xff]  }
 0x105   :  { %2128 = vmatprep.subr.bf16.mxu1 %v2910_v63  ;;  %v2986_v63 = vld [vmem:[#allocation6 + $0x850] ss:$24 sps:$4 sm:$0xff]  }
 0x107   :  { %2088 = vmatpush2.bf16.msra.mxu0 %v2905_v0  ;;  %v2991_v0 = vld [vmem:[#allocation6 + $0x824] ss:$24 sps:$4 sm:$0xff]  }
 0x108   :  { %2129 = vmatpush2.bf16.msra.mxu1 %v2908_v1  ;;  %2089 = vmatprep.subr.bf16.mxu0 %v2913_v2  ;;  %v2989_v1 = vld [vmem:[#allocation6 + $0x820] ss:$24 sps:$4 sm:$0xff]   ;;  %v2994_v2 = vld [vmem:[#allocation6 + $0x7f4] ss:$24 sps:$4 sm:$0xff]  }
 0x109   :  { %2130 = vmatprep.subr.bf16.mxu1 %v2916_v3  ;;  %v2992_v3 = vld [vmem:[#allocation6 + $0x7f0] ss:$24 sps:$4 sm:$0xff]  }
 0x10b   :  { %2090 = vmatpush2.bf16.msra.mxu0 %v2911_v4  ;;  %v2997_v4 = vld [vmem:[#allocation6 + $0x7c4] ss:$24 sps:$4 sm:$0xff]  }
 0x10c   :  { %2131 = vmatpush2.bf16.msra.mxu1 %v2914_v5  ;;  %2091 = vmatprep.subr.bf16.mxu0 %v2919_v6  ;;  %v2995_v5 = vld [vmem:[#allocation6 + $0x7c0] ss:$24 sps:$4 sm:$0xff]   ;;  %v3000_v6 = vld [vmem:[#allocation6 + $0x794] ss:$24 sps:$4 sm:$0xff]  }
 0x10d   :  { %2132 = vmatprep.subr.bf16.mxu1 %v2922_v7  ;;  %v2998_v7 = vld [vmem:[#allocation6 + $0x790] ss:$24 sps:$4 sm:$0xff]  }
 0x10f   :  { %2092 = vmatpush2.bf16.msra.mxu0 %v2917_v8  ;;  %v2222_v8 = vsub.s32 0, %v3124_v43 }
 0x110   :  { %2133 = vmatpush2.bf16.msra.mxu1 %v2920_v9  ;;  %2093 = vmatprep.subr.bf16.mxu0 %v2925_v10  ;;  %v2226_v9 = vsub.s32 1, %v3124_v43  ;;  %v2218_v10 = vld [vmem:[#allocation8] sm:$0x3f] }
 0x111   :  { %2134 = vmatprep.subr.bf16.mxu1 %v2928_v11  ;;  %v2223_v11 = vrot.slane %v2218_v10, %v2222_v8 }
 0x113   :  { %2094 = vmatpush2.bf16.msra.mxu0 %v2923_v12  ;;  %v2227_v12 = vrot.slane %v2218_v10, %v2226_v9 }
 0x114   :  { %2135 = vmatpush2.bf16.msra.mxu1 %v2926_v13  ;;  %2095 = vmatprep.subr.bf16.mxu0 %v2931_v14  ;;  %v3001_v14 = vld.sshfl [vmem:[#allocation3 + $0x8] sm:$0x33 pattern:$0x76325410] }
 0x115   :  { %2136 = vmatprep.subr.bf16.mxu1 %v2934_v15 }
 0x117   :  { %2096 = vmatpush2.bf16.msra.mxu0 %v2929_v16 }
 0x118   :  { %2137 = vmatpush2.bf16.msra.mxu1 %v2932_v17  ;;  %2097 = vmatprep.subr.bf16.mxu0 %v2937_v18 }
 0x119   :  { %2138 = vmatprep.subr.bf16.mxu1 %v2940_v19 }
 0x11b   :  { %2098 = vmatpush2.bf16.msra.mxu0 %v2935_v20 }
 0x11c   :  { %2139 = vmatpush2.bf16.msra.mxu1 %v2938_v21  ;;  %2099 = vmatprep.subr.bf16.mxu0 %v2943_v22  ;;  %v2244_v21 = vcombine.low %v2223_v11, %v2227_v12 }
 0x11d   :  { %2140 = vmatprep.subr.bf16.mxu1 %v2946_v23 }
 0x11f   :  { %2100 = vmatpush2.bf16.msra.mxu0 %v2941_v24 }
 0x120   :  { %2141 = vmatpush2.bf16.msra.mxu1 %v2944_v25  ;;  %2101 = vmatprep.subr.bf16.mxu0 %v2949_v26 }
 0x121   :  { %2142 = vmatprep.subr.bf16.mxu1 %v2952_v27 }
 0x123   :  { %2102 = vmatpush2.bf16.msra.mxu0 %v2947_v28  ;;  %v2230_v28 = vsub.s32 2, %v3124_v43 }
 0x124   :  { %2143 = vmatpush2.bf16.msra.mxu1 %v2950_v29  ;;  %2153 = vmatprep.subr.bf16.mxu0 %v2955_v30  ;;  %v2234_v29 = vsub.s32 3, %v3124_v43 }
 0x126   :  { %v1859_v33 = vpop.f32.mrf.mxu0  ;;  %2104 = vmatmul.mubr.bf16.vlgmr.msra.gmra.mxu0 %v3127_v54  ;;  %v2964_v54 = vld [vmem:[#allocation6 + $0x6d4] ss:$24 sps:$4 sm:$0xff]  }
 0x127   :  { %v1900_v34 = vpop.f32.mrf.mxu1  ;;  %2145 = vmatmul.mubr.bf16.vlgmr.msra.gmra.mxu1 %v3133_v60  ;;  %2154 = vmatpush1.bf16.msra.mxu0 %v2953_v31 }
 0x128   :  { %v3161_v35 = vadd.f32 %v1900_v34, %v1859_v33  ;;  %2185 = vmatprep.mubr.bf16.mxu0 %v3148_v39  ;;  %v3164_v37 = vpop.f32.mrf.mxu0  ;;  %2155 = vmatprep.subr.bf16.mxu0 %v2958_v32  ;;  %v2965_v39 = vld [vmem:[#allocation6 + $0x6a0] ss:$24 sps:$4 sm:$0xff]   ;;  %v2231_v33 = vrot.slane %v2218_v10, %v2230_v28  ;;  %v2235_v34 = vrot.slane %v2218_v10, %v2234_v29 }
 0x129   :  { %v3166_v40 = vpop.f32.mrf.mxu1 }
 0x12a   :  { %v1863_v41 = vpop.f32.mrf.mxu0  ;;  %v1903_v16 = vadd.f32 %v3166_v40, %v3164_v37 }
 0x12b   :  { %v1904_v42 = vpop.f32.mrf.mxu1  ;;  %2156 = vmatpush1.bf16.msra.mxu0 %v2956_v36 }
 0x12c   :  { %v1864_v45 = vpop.f32.mrf.mxu0  ;;  %2157 = vmatprep.subr.bf16.mxu0 %v2961_v38 }
 0x12d   :  { %v1905_v60 = vpop.f32.mrf.mxu1 }
 0x12f   :  { %2158 = vmatpush1.bf16.msra.mxu0 %v2959_v44  ;;  %v2245_v44 = vcombine.low %v2231_v33, %v2235_v34 }
 0x130   :  { %2159 = vmatprep.subr.bf16.mxu0 %v2964_v54 }
 0x133   :  { %2160 = vmatpush1.bf16.msra.mxu0 %v2962_v59 }
 0x134   :  { %2161 = vmatprep.subr.bf16.mxu0 %v2967_v62 }
 0x137   :  { %2162 = vmatpush1.bf16.msra.mxu0 %v2965_v39 }
 0x138   :  { %2163 = vmatprep.subr.bf16.mxu0 %v2970_v46 }
 0x13b   :  { %2164 = vmatpush1.bf16.msra.mxu0 %v2968_v47 }
 0x13c   :  { %2165 = vmatprep.subr.bf16.mxu0 %v2973_v48 }
 0x13f   :  { %2166 = vmatpush1.bf16.msra.mxu0 %v2971_v49 }
 0x140   :  { %2167 = vmatprep.subr.bf16.mxu0 %v2976_v50 }
 0x143   :  { %2168 = vmatpush1.bf16.msra.mxu0 %v2974_v51 }
 0x144   :  { %2169 = vmatprep.subr.bf16.mxu0 %v2979_v52 }
 0x147   :  { %2170 = vmatpush2.bf16.msra.mxu0 %v2977_v53  ;;  %v2238_v53 = vsub.s32 4, %v3124_v43 }
 0x148   :  { %2171 = vmatprep.subr.bf16.mxu0 %v2982_v55  ;;  %v2242_v55 = vsub.s32 5, %v3124_v43 }
 0x14b   :  { %2172 = vmatpush2.bf16.msra.mxu0 %v2980_v56  ;;  %v2239_v56 = vrot.slane %v2218_v10, %v2238_v53 }
 0x14c   :  { %2173 = vmatprep.subr.bf16.mxu0 %v2985_v57  ;;  %v2243_v57 = vrot.slane %v2218_v10, %v2242_v55 }
 0x14f   :  { %2174 = vmatpush2.bf16.msra.mxu0 %v2983_v58 }
 0x150   :  { %2175 = vmatprep.subr.bf16.mxu0 %v2988_v61 }
 0x153   :  { %2176 = vmatpush2.bf16.msra.mxu0 %v2986_v63 }
 0x154   :  { %2177 = vmatprep.subr.bf16.mxu0 %v2991_v0 }
 0x157   :  { %2178 = vmatpush2.bf16.msra.mxu0 %v2989_v1 }
 0x158   :  { %2179 = vmatprep.subr.bf16.mxu0 %v2994_v2  ;;  %v2246_v2 = vcombine.low %v2239_v56, %v2243_v57 }
 0x15b   :  { %2180 = vmatpush2.bf16.msra.mxu0 %v2992_v3 }
 0x15c   :  { %2181 = vmatprep.subr.bf16.mxu0 %v2997_v4 }
 0x15f   :  { %2182 = vmatpush2.bf16.msra.mxu0 %v2995_v5 }
 0x160   :  { %2183 = vmatprep.subr.bf16.mxu0 %v3000_v6 }
 0x163   :  { %2184 = vmatpush2.bf16.msra.mxu0 %v2998_v7 }
 0x166   :  { %v1941_v13 = vpop.f32.mrf.mxu0  ;;  %2186 = vmatmul.mubr.bf16.vlgmr.msra.gmra.mxu0 %v3001_v14 }
 0x167   :  { %v1982_v15 = vpop.f32.mrf.mxu1  ;;  %v1942_v19 = vadd.f32 %v1941_v13, %v3161_v35 }
 0x168   :  { %v1943_v17 = vpop.f32.mrf.mxu0 }
 0x169   :  { %v1984_v18 = vpop.f32.mrf.mxu1  ;;  %v1944_v20 = vadd.f32 %v1943_v17, %v1903_v16 }
 0x16a   :  { %v1945_v22 = vpop.f32.mrf.mxu0 }
 0x16b   :  { %v1986_v23 = vpop.f32.mrf.mxu1  ;;  %v2200_v24 = vcombine.low %v1942_v19, %v1944_v20 }
 0x16c   :  { %v1946_v25 = vpop.f32.mrf.mxu0 }
 0x16d   :  { %v1987_v26 = vpop.f32.mrf.mxu1  ;;  %v2250_v27 = vadd.f32 %v2244_v21, %v2200_v24 }
 0x16f   :  { %2253 = vst [vmem:[#allocation9] sm:$0xff] %v2250_v27 }
 0x1a6   :  { %v2023_v30 = vpop.f32.mrf.mxu0 }
 0x1a7   :  { %v2064_v31 = vpop.f32.mrf.mxu1  ;;  %v2024_v32 = vadd.f32 %v2023_v30, %v1982_v15 }
 0x1a8   :  { %v2025_v36 = vpop.f32.mrf.mxu0 }
 0x1a9   :  { %v2066_v35 = vpop.f32.mrf.mxu1  ;;  %v2026_v37 = vadd.f32 %v2025_v36, %v1984_v18  ;;  %v2065_v41 = vadd.f32 %v2064_v31, %v2024_v32 }
 0x1aa   :  { %v2027_v40 = vpop.f32.mrf.mxu0 }
 0x1ab   :  { %v2068_v38 = vpop.f32.mrf.mxu1  ;;  %v2067_v42 = vadd.f32 %v2066_v35, %v2026_v37 }
 0x1ac   :  { %v2028_v45 = vpop.f32.mrf.mxu0 }
 0x1ad   :  { %v2069_v54 = vpop.f32.mrf.mxu1  ;;  %v2201_v60 = vcombine.low %v2065_v41, %v2067_v42 }
 0x1af   :  { %v2251_v59 = vadd.f32 %v2245_v44, %v2201_v60 }
 0x1b1   :  { %2254 = vst [vmem:[#allocation9 + $0x8] sm:$0xff] %v2251_v59 }
 0x1e6   :  { %v2105_v62 = vpop.f32.mrf.mxu0 }
 0x1e7   :  { %v2146_v39 = vpop.f32.mrf.mxu1 }
 0x1e8   :  { %v2147_v46 = vadd.f32 %v2146_v39, %v2105_v62  ;;  %v2107_v47 = vpop.f32.mrf.mxu0 }
 0x1e9   :  { %v2148_v48 = vpop.f32.mrf.mxu1 }
 0x1ea   :  { %v2109_v49 = vpop.f32.mrf.mxu0  ;;  %v2149_v61 = vadd.f32 %v2148_v48, %v2107_v47 }
 0x1eb   :  { %v2150_v50 = vpop.f32.mrf.mxu1 }
 0x1ec   :  { %v2110_v51 = vpop.f32.mrf.mxu0 }
 0x1ed   :  { %v2151_v52 = vpop.f32.mrf.mxu1 }
 0x226   :  { %v2187_v58 = vpop.f32.mrf.mxu0 }
 0x227   :  { %v2188_v0 = vadd.f32 %v2187_v58, %v2147_v46 }
 0x228   :  { %v2189_v63 = vpop.f32.mrf.mxu0 }
 0x229   :  { %v2190_v1 = vadd.f32 %v2189_v63, %v2149_v61 }
 0x22a   :  { %v2191_v3 = vpop.f32.mrf.mxu0 }
 0x22b   :  { %v2202_v4 = vcombine.low %v2188_v0, %v2190_v1 }
 0x22c   :  { %v2192_v5 = vpop.f32.mrf.mxu0 }
 0x22d   :  { %v2252_v6 = vadd.f32 %v2246_v2, %v2202_v4 }
 0x22f   :  { %2255 = vst [vmem:[#allocation9 + $0x10] sm:$0xff] %v2252_v6 }
 0x230   :  { %3073 = shalt.err (!%p3070_p5)
}
 0x231   :  { %2265 = dma.vmem_to_hbm [thread:$0]  %s2263_s2, 384, %s3183_s3, [#allocation5]  }
 0x232   :  { %3086 = dma.done.wait [#allocation5], 384  }
 0x233   :  { %3087 = vsyncadd [#allocation5], 4294966912 }
 0x234   :  { %2269 = vsyncpa [#allocation4], 1 }
 0x235   :  { %2270 = vsyncpa [#allocation7], 1 }
 0x236   :  { %2271 = vsyncpa [#allocation5], 1 }

</bundles_post_ra>
